<compile_context>
chip_gen: v7x
topology: tpu7x:2x2x1
jax: 0.10.0
libtpu: 0.0.40
codegen_flags: <defaults>
</compile_context>

<pallas_src>
import functools

import jax
import jax.numpy as jnp
from jax import lax
from jax.experimental import pallas as pl
from jax.experimental.pallas import tpu as pltpu


def _sepconv_kernel(x_ref, wdw_ref, wpw_ref, o_ref, *scratch, K, pad, W, padf):
    """One batch block, channels folded into sublanes.

    x_ref:   (NB*Cin, H*W)          flattened input rows (VMEM), caller dtype
    wdw_ref: (NB*Cin, K*K)          depthwise weights, row r holds channel r % Cin (VMEM, f32)
    wpw_ref: (Cout, Cin)            pointwise 1x1 weights (VMEM, f32)
    o_ref:   (NB*Cout, H*W)         flattened output rows (VMEM), caller dtype
    scratch: optional (NB*Cin, H*W + 2*padf) f32 zero-padded flat rows (VMEM)
    """
    R, L = x_ref.shape
    Cout, Cin = wpw_ref.shape
    NB = R // Cin

    x = x_ref[...].astype(jnp.float32)

    if padf > 0:
        xpad_ref = scratch[0]
        # Zero only the two pad margins; the interior is fully overwritten below.
        xpad_ref[:, :padf] = jnp.zeros((R, padf), jnp.float32)
        xpad_ref[:, padf + L:] = jnp.zeros((R, padf), jnp.float32)
        xpad_ref[:, padf:padf + L] = x
        xpad = xpad_ref[...]
        # Column coordinate of every flattened pixel (built once, reused per kw group)
        # to mask taps that would wrap across image-row boundaries.
        col = lax.broadcasted_iota(jnp.int32, (R, L), 1) % W
    else:
        xpad = x
        col = None

    wdw = wdw_ref[...]  # (R, K*K) f32

    # ---- Depthwise KxK conv: statically unrolled taps, each a full-(R, L) FMA
    # against a per-sublane weight column; one column mask per kw group. ----
    dw_acc = None
    for kw in range(K):
        dcol = kw - pad
        part = None
        for kh in range(K):
            drow = kh - pad
            start = padf + drow * W + dcol
            patch = xpad[:, start:start + L]
            t = kh * K + kw
            term = patch * wdw[:, t:t + 1]
            part = term if part is None else part + term
        if dcol < 0:
            part = jnp.where(col >= -dcol, part, 0.0)
        elif dcol > 0:
            part = jnp.where(col < W - dcol, part, 0.0)
        dw_acc = part if dw_acc is None else dw_acc + part

    # ---- Pointwise 1x1 conv: per input channel, sublane-broadcast its depthwise
    # row and FMA against the (Cout, 1) weight column; single unmasked store. ----
    wpw = wpw_ref[...]  # (Cout, Cin) f32
    outs = []
    for n in range(NB):
        acc = None
        for ci in range(Cin):
            r = n * Cin + ci
            term = dw_acc[r:r + 1, :] * wpw[:, ci:ci + 1]  # (1,L)*(Cout,1) -> (Cout,L)
            acc = term if acc is None else acc + term
        outs.append(acc)
    out = outs[0] if NB == 1 else jnp.concatenate(outs, axis=0)
    o_ref[...] = out.astype(o_ref.dtype)


def _is_v7x():
    try:
        kind = jax.devices()[0].device_kind.lower()
    except Exception:
        return False
    return "v7" in kind


def separable_conv2d(x, w_depthwise, w_pointwise, *, stride=1, padding=0, dilation=1):
    """x: (N, Cin, H, W); w_depthwise: (Cin, 1, K, K); w_pointwise: (Cout, Cin, 1, 1)."""
    N, Cin, H, W = x.shape
    Cout = w_pointwise.shape[0]
    K = w_depthwise.shape[-1]
    # TODO(synk): stride/dilation > 1 and non-'same' padding are not used by this
    # backbone (covers the module default k=1/p=0 and the usual k=3/p=1).
    assert stride == 1 and dilation == 1
    assert 2 * padding == K - 1

    L = H * W
    out_dtype = x.dtype

    # Fold channel into the sublane axis: (N, Cin, H, W) -> (N*Cin, H*W) is a free
    # row-major reshape; all loads/FMAs/stores become fully (8,128)-dense tiles.
    x2d = x.reshape(N * Cin, L)

    # Batch block: whole batch in one grid step on v5e/v6e (amortizes ~0.35us/step);
    # on v7x split into 2 parallel steps (one per TensorCore) when that keeps the
    # row blocks 8-sublane aligned.
    NB = N
    if (_is_v7x() and N % 2 == 0
            and ((N // 2) * Cin) % 8 == 0 and ((N // 2) * Cout) % 8 == 0):
        NB = N // 2
    grid = (N // NB,)

    # 128-aligned zero margin on each side of the flattened row (>= pad*(W+1)).
    padf = 0 if padding == 0 else ((padding * (W + 1) + 127) // 128) * 128

    # Tiny VMEM weight constants, pre-laid-out to match the folded row layout.
    wdw_rows = jnp.tile(w_depthwise.reshape(Cin, K * K).astype(jnp.float32), (NB, 1))
    wpw = w_pointwise.reshape(Cout, Cin).astype(jnp.float32)

    kernel = functools.partial(_sepconv_kernel, K=K, pad=padding, W=W, padf=padf)

    scratch_shapes = []
    if padf > 0:
        scratch_shapes.append(pltpu.VMEM((NB * Cin, L + 2 * padf), jnp.float32))

    out2d = pl.pallas_call(
        kernel,
        out_shape=jax.ShapeDtypeStruct((N * Cout, L), out_dtype),
        grid=grid,
        in_specs=[
            pl.BlockSpec((NB * Cin, L), lambda n: (n, 0)),
            pl.BlockSpec((NB * Cin, K * K), lambda n: (0, 0)),
            pl.BlockSpec((Cout, Cin), lambda n: (0, 0)),
        ],
        out_specs=pl.BlockSpec((NB * Cout, L), lambda n: (n, 0)),
        scratch_shapes=scratch_shapes,
        compiler_params=pltpu.CompilerParams(dimension_semantics=("parallel",)),
    )(x2d, wdw_rows, wpw)

    # TODO(synk): real Xception shapes (Cin~728, H*W~22500) need Cin/spatial tiling
    # sized for v7x's 64 MiB VMEM (set vmem_limit_bytes) and an MXU pointwise
    # (jnp.dot with preferred_element_type=f32) instead of the VPU channel mix.
    return out2d.reshape(N, Cout, H, W)


def _reference(x, w_depthwise, w_pointwise, *, padding):
    cin = x.shape[1]
    dw = jax.lax.conv_general_dilated(
        x, w_depthwise, window_strides=(1, 1),
        padding=[(padding, padding), (padding, padding)],
        dimension_numbers=("NCHW", "OIHW", "NCHW"),
        feature_group_count=cin)
    return jax.lax.conv_general_dilated(
        dw, w_pointwise, window_strides=(1, 1), padding="VALID",
        dimension_numbers=("NCHW", "OIHW", "NCHW"))


if __name__ == "__main__":
    # Module hyperparameters (typical Xception-style usage): in=4, out=8, k=3, pad=1.
    N, Cin, Cout, H, W, K, PAD = 2, 4, 8, 16, 16, 3, 1

    key = jax.random.PRNGKey(0)
    k1, k2, k3 = jax.random.split(key, 3)
    x = jax.random.normal(k1, (N, Cin, H, W), jnp.float32)
    # conv1: Conv2d(Cin, Cin, K, groups=Cin, bias=False) -> weight (Cin, 1, K, K)
    w_dw = jax.random.normal(k2, (Cin, 1, K, K), jnp.float32) * 0.1
    # pointwise: Conv2d(Cin, Cout, 1, bias=False) -> weight (Cout, Cin, 1, 1)
    w_pw = jax.random.normal(k3, (Cout, Cin, 1, 1), jnp.float32) * 0.1

    out = separable_conv2d(x, w_dw, w_pw, padding=PAD)
    out = jax.block_until_ready(out)

    ref = _reference(x, w_dw, w_pw, padding=PAD)
    assert out.shape == ref.shape == (N, Cout, H, W)
    assert jnp.allclose(out, ref, atol=1e-4, rtol=1e-4)

    print("KERNEL_OK")
</pallas_src>

<mosaic_0001>
module attributes {stable_mosaic.version = 11 : i64} {
  func.func @_sepconv_kernel(%arg0: i32, %arg1: memref<8x256xf32, #tpu.memory_space<vmem>>, %arg2: memref<8x9xf32, #tpu.memory_space<vmem>>, %arg3: memref<8x4xf32, #tpu.memory_space<vmem>>, %arg4: memref<16x256xf32, #tpu.memory_space<vmem>>, %arg5: memref<8x512xf32, #tpu.memory_space<vmem>>) attributes {dimension_semantics = [#tpu.dimension_semantics<parallel>], iteration_bounds = array<i64: 1>, scalar_prefetch = 0 : i64, scratch_operands = 1 : i64, tpu.core_type = #tpu.core_type<tc>, window_params = [{transform_indices = @transform_0, window_bounds = array<i64: 8, 256>}, {pipeline_mode = #tpu.pipeline_mode<synchronous>, transform_indices = @transform_1, window_bounds = array<i64: 8, 9>}, {pipeline_mode = #tpu.pipeline_mode<synchronous>, transform_indices = @transform_2, window_bounds = array<i64: 8, 4>}, {transform_indices = @transform_3, window_bounds = array<i64: 16, 256>}]} {
    %c0 = arith.constant 0 : index
    %c0_0 = arith.constant 0 : index
    %0 = vector.load %arg1[%c0, %c0_0] : memref<8x256xf32, #tpu.memory_space<vmem>>, vector<8x256xf32>
    %cst = arith.constant 0.000000e+00 : f32
    %1 = vector.broadcast %cst : f32 to vector<8x128xf32>
    %c0_1 = arith.constant 0 : index
    %c0_2 = arith.constant 0 : index
    %2 = vector.load %arg5[%c0_1, %c0_2] : memref<8x512xf32, #tpu.memory_space<vmem>>, vector<8x128xf32>
    tpu.vector_store %arg5[%c0_1, %c0_2], %1 {strides = array<i32>} : memref<8x512xf32, #tpu.memory_space<vmem>>, vector<8x128xf32>,
    %cst_3 = arith.constant 0.000000e+00 : f32
    %3 = vector.broadcast %cst_3 : f32 to vector<8x128xf32>
    %c0_4 = arith.constant 0 : index
    %c384 = arith.constant 384 : index
    %4 = vector.load %arg5[%c0_4, %c384] : memref<8x512xf32, #tpu.memory_space<vmem>>, vector<8x128xf32>
    tpu.vector_store %arg5[%c0_4, %c384], %3 {strides = array<i32>} : memref<8x512xf32, #tpu.memory_space<vmem>>, vector<8x128xf32>,
    %c0_5 = arith.constant 0 : index
    %c128 = arith.constant 128 : index
    %5 = vector.load %arg5[%c0_5, %c128] : memref<8x512xf32, #tpu.memory_space<vmem>>, vector<8x256xf32>
    tpu.vector_store %arg5[%c0_5, %c128], %0 {strides = array<i32>} : memref<8x512xf32, #tpu.memory_space<vmem>>, vector<8x256xf32>,
    %c0_6 = arith.constant 0 : index
    %c0_7 = arith.constant 0 : index
    %6 = vector.load %arg5[%c0_6, %c0_7] : memref<8x512xf32, #tpu.memory_space<vmem>>, vector<8x512xf32>
    %7 = tpu.iota {dimensions = array<i32: 1>} : vector<8x256xi32>
    %c16_i32 = arith.constant 16 : i32
    %c0_i32 = arith.constant 0 : i32
    %8 = arith.cmpi eq, %c16_i32, %c0_i32 : i32
    %c1_i32 = arith.constant 1 : i32
    %9 = arith.select %8, %c1_i32, %c16_i32 : i32
    %10 = vector.broadcast %9 : i32 to vector<8x256xi32>
    %11 = arith.remsi %7, %10 : vector<8x256xi32>
    %c0_i32_8 = arith.constant 0 : i32
    %12 = vector.broadcast %c0_i32_8 : i32 to vector<8x256xi32>
    %13 = arith.cmpi ne, %11, %12 : vector<8x256xi32>
    %c0_i32_9 = arith.constant 0 : i32
    %14 = vector.broadcast %c0_i32_9 : i32 to vector<8x256xi32>
    %15 = arith.cmpi slt, %11, %14 : vector<8x256xi32>
    %c0_i32_10 = arith.constant 0 : i32
    %16 = arith.cmpi slt, %9, %c0_i32_10 : i32
    %17 = vector.broadcast %16 : i1 to vector<8x256xi1>
    %18 = vector.broadcast %17 : vector<8x256xi1> to vector<8x256xi1>
    %19 = arith.xori %15, %18 : vector<8x256xi1>
    %20 = arith.andi %19, %13 : vector<8x256xi1>
    %21 = vector.broadcast %9 : i32 to vector<8x256xi32>
    %22 = arith.addi %11, %21 : vector<8x256xi32>
    %23 = arith.select %20, %22, %11 : vector<8x256xi1>, vector<8x256xi32>
    %c0_11 = arith.constant 0 : index
    %c0_12 = arith.constant 0 : index
    %24 = vector.load %arg2[%c0_11, %c0_12] : memref<8x9xf32, #tpu.memory_space<vmem>>, vector<8x9xf32>
    %25 = vector.extract_strided_slice %6 {offsets = [0, 111], sizes = [8, 256], strides = [1, 1]} : vector<8x512xf32> to vector<8x256xf32>
    %26 = vector.extract_strided_slice %24 {offsets = [0, 0], sizes = [8, 1], strides = [1, 1]} : vector<8x9xf32> to vector<8x1xf32>
    %27 = vector.broadcast %26 : vector<8x1xf32> to vector<8x256xf32>
    %28 = arith.mulf %25, %27 : vector<8x256xf32>
    %29 = vector.extract_strided_slice %6 {offsets = [0, 127], sizes = [8, 256], strides = [1, 1]} : vector<8x512xf32> to vector<8x256xf32>
    %30 = vector.extract_strided_slice %24 {offsets = [0, 3], sizes = [8, 1], strides = [1, 1]} : vector<8x9xf32> to vector<8x1xf32>
    %31 = vector.broadcast %30 : vector<8x1xf32> to vector<8x256xf32>
    %32 = arith.mulf %29, %31 : vector<8x256xf32>
    %33 = arith.addf %28, %32 : vector<8x256xf32>
    %34 = vector.extract_strided_slice %6 {offsets = [0, 143], sizes = [8, 256], strides = [1, 1]} : vector<8x512xf32> to vector<8x256xf32>
    %35 = vector.extract_strided_slice %24 {offsets = [0, 6], sizes = [8, 1], strides = [1, 1]} : vector<8x9xf32> to vector<8x1xf32>
    %36 = vector.broadcast %35 : vector<8x1xf32> to vector<8x256xf32>
    %37 = arith.mulf %34, %36 : vector<8x256xf32>
    %38 = arith.addf %33, %37 : vector<8x256xf32>
    %c1_i32_13 = arith.constant 1 : i32
    %39 = vector.broadcast %c1_i32_13 : i32 to vector<8x256xi32>
    %40 = arith.cmpi sge, %23, %39 : vector<8x256xi32>
    %cst_14 = arith.constant 0.000000e+00 : f32
    %41 = vector.broadcast %cst_14 : f32 to vector<8x256xf32>
    %42 = arith.select %40, %38, %41 : vector<8x256xi1>, vector<8x256xf32>
    %43 = vector.extract_strided_slice %6 {offsets = [0, 112], sizes = [8, 256], strides = [1, 1]} : vector<8x512xf32> to vector<8x256xf32>
    %44 = vector.extract_strided_slice %24 {offsets = [0, 1], sizes = [8, 1], strides = [1, 1]} : vector<8x9xf32> to vector<8x1xf32>
    %45 = vector.broadcast %44 : vector<8x1xf32> to vector<8x256xf32>
    %46 = arith.mulf %43, %45 : vector<8x256xf32>
    %47 = vector.extract_strided_slice %6 {offsets = [0, 128], sizes = [8, 256], strides = [1, 1]} : vector<8x512xf32> to vector<8x256xf32>
    %48 = vector.extract_strided_slice %24 {offsets = [0, 4], sizes = [8, 1], strides = [1, 1]} : vector<8x9xf32> to vector<8x1xf32>
    %49 = vector.broadcast %48 : vector<8x1xf32> to vector<8x256xf32>
    %50 = arith.mulf %47, %49 : vector<8x256xf32>
    %51 = arith.addf %46, %50 : vector<8x256xf32>
    %52 = vector.extract_strided_slice %6 {offsets = [0, 144], sizes = [8, 256], strides = [1, 1]} : vector<8x512xf32> to vector<8x256xf32>
    %53 = vector.extract_strided_slice %24 {offsets = [0, 7], sizes = [8, 1], strides = [1, 1]} : vector<8x9xf32> to vector<8x1xf32>
    %54 = vector.broadcast %53 : vector<8x1xf32> to vector<8x256xf32>
    %55 = arith.mulf %52, %54 : vector<8x256xf32>
    %56 = arith.addf %51, %55 : vector<8x256xf32>
    %57 = arith.addf %42, %56 : vector<8x256xf32>
    %58 = vector.extract_strided_slice %6 {offsets = [0, 113], sizes = [8, 256], strides = [1, 1]} : vector<8x512xf32> to vector<8x256xf32>
    %59 = vector.extract_strided_slice %24 {offsets = [0, 2], sizes = [8, 1], strides = [1, 1]} : vector<8x9xf32> to vector<8x1xf32>
    %60 = vector.broadcast %59 : vector<8x1xf32> to vector<8x256xf32>
    %61 = arith.mulf %58, %60 : vector<8x256xf32>
    %62 = vector.extract_strided_slice %6 {offsets = [0, 129], sizes = [8, 256], strides = [1, 1]} : vector<8x512xf32> to vector<8x256xf32>
    %63 = vector.extract_strided_slice %24 {offsets = [0, 5], sizes = [8, 1], strides = [1, 1]} : vector<8x9xf32> to vector<8x1xf32>
    %64 = vector.broadcast %63 : vector<8x1xf32> to vector<8x256xf32>
    %65 = arith.mulf %62, %64 : vector<8x256xf32>
    %66 = arith.addf %61, %65 : vector<8x256xf32>
    %67 = vector.extract_strided_slice %6 {offsets = [0, 145], sizes = [8, 256], strides = [1, 1]} : vector<8x512xf32> to vector<8x256xf32>
    %68 = vector.extract_strided_slice %24 {offsets = [0, 8], sizes = [8, 1], strides = [1, 1]} : vector<8x9xf32> to vector<8x1xf32>
    %69 = vector.broadcast %68 : vector<8x1xf32> to vector<8x256xf32>
    %70 = arith.mulf %67, %69 : vector<8x256xf32>
    %71 = arith.addf %66, %70 : vector<8x256xf32>
    %c15_i32 = arith.constant 15 : i32
    %72 = vector.broadcast %c15_i32 : i32 to vector<8x256xi32>
    %73 = arith.cmpi slt, %23, %72 : vector<8x256xi32>
    %cst_15 = arith.constant 0.000000e+00 : f32
    %74 = vector.broadcast %cst_15 : f32 to vector<8x256xf32>
    %75 = arith.select %73, %71, %74 : vector<8x256xi1>, vector<8x256xf32>
    %76 = arith.addf %57, %75 : vector<8x256xf32>
    %c0_16 = arith.constant 0 : index
    %c0_17 = arith.constant 0 : index
    %77 = vector.load %arg3[%c0_16, %c0_17] : memref<8x4xf32, #tpu.memory_space<vmem>>, vector<8x4xf32>
    %78 = vector.extract_strided_slice %76 {offsets = [0, 0], sizes = [1, 256], strides = [1, 1]} : vector<8x256xf32> to vector<1x256xf32>
    %79 = vector.extract_strided_slice %77 {offsets = [0, 0], sizes = [8, 1], strides = [1, 1]} : vector<8x4xf32> to vector<8x1xf32>
    %80 = vector.broadcast %78 : vector<1x256xf32> to vector<8x256xf32>
    %81 = vector.broadcast %79 : vector<8x1xf32> to vector<8x256xf32>
    %82 = arith.mulf %80, %81 : vector<8x256xf32>
    %83 = vector.extract_strided_slice %76 {offsets = [1, 0], sizes = [1, 256], strides = [1, 1]} : vector<8x256xf32> to vector<1x256xf32>
    %84 = vector.extract_strided_slice %77 {offsets = [0, 1], sizes = [8, 1], strides = [1, 1]} : vector<8x4xf32> to vector<8x1xf32>
    %85 = vector.broadcast %83 : vector<1x256xf32> to vector<8x256xf32>
    %86 = vector.broadcast %84 : vector<8x1xf32> to vector<8x256xf32>
    %87 = arith.mulf %85, %86 : vector<8x256xf32>
    %88 = arith.addf %82, %87 : vector<8x256xf32>
    %89 = vector.extract_strided_slice %76 {offsets = [2, 0], sizes = [1, 256], strides = [1, 1]} : vector<8x256xf32> to vector<1x256xf32>
    %90 = vector.extract_strided_slice %77 {offsets = [0, 2], sizes = [8, 1], strides = [1, 1]} : vector<8x4xf32> to vector<8x1xf32>
    %91 = vector.broadcast %89 : vector<1x256xf32> to vector<8x256xf32>
    %92 = vector.broadcast %90 : vector<8x1xf32> to vector<8x256xf32>
    %93 = arith.mulf %91, %92 : vector<8x256xf32>
    %94 = arith.addf %88, %93 : vector<8x256xf32>
    %95 = vector.extract_strided_slice %76 {offsets = [3, 0], sizes = [1, 256], strides = [1, 1]} : vector<8x256xf32> to vector<1x256xf32>
    %96 = vector.extract_strided_slice %77 {offsets = [0, 3], sizes = [8, 1], strides = [1, 1]} : vector<8x4xf32> to vector<8x1xf32>
    %97 = vector.broadcast %95 : vector<1x256xf32> to vector<8x256xf32>
    %98 = vector.broadcast %96 : vector<8x1xf32> to vector<8x256xf32>
    %99 = arith.mulf %97, %98 : vector<8x256xf32>
    %100 = arith.addf %94, %99 : vector<8x256xf32>
    %101 = vector.extract_strided_slice %76 {offsets = [4, 0], sizes = [1, 256], strides = [1, 1]} : vector<8x256xf32> to vector<1x256xf32>
    %102 = vector.extract_strided_slice %77 {offsets = [0, 0], sizes = [8, 1], strides = [1, 1]} : vector<8x4xf32> to vector<8x1xf32>
    %103 = vector.broadcast %101 : vector<1x256xf32> to vector<8x256xf32>
    %104 = vector.broadcast %102 : vector<8x1xf32> to vector<8x256xf32>
    %105 = arith.mulf %103, %104 : vector<8x256xf32>
    %106 = vector.extract_strided_slice %76 {offsets = [5, 0], sizes = [1, 256], strides = [1, 1]} : vector<8x256xf32> to vector<1x256xf32>
    %107 = vector.extract_strided_slice %77 {offsets = [0, 1], sizes = [8, 1], strides = [1, 1]} : vector<8x4xf32> to vector<8x1xf32>
    %108 = vector.broadcast %106 : vector<1x256xf32> to vector<8x256xf32>
    %109 = vector.broadcast %107 : vector<8x1xf32> to vector<8x256xf32>
    %110 = arith.mulf %108, %109 : vector<8x256xf32>
    %111 = arith.addf %105, %110 : vector<8x256xf32>
    %112 = vector.extract_strided_slice %76 {offsets = [6, 0], sizes = [1, 256], strides = [1, 1]} : vector<8x256xf32> to vector<1x256xf32>
    %113 = vector.extract_strided_slice %77 {offsets = [0, 2], sizes = [8, 1], strides = [1, 1]} : vector<8x4xf32> to vector<8x1xf32>
    %114 = vector.broadcast %112 : vector<1x256xf32> to vector<8x256xf32>
    %115 = vector.broadcast %113 : vector<8x1xf32> to vector<8x256xf32>
    %116 = arith.mulf %114, %115 : vector<8x256xf32>
    %117 = arith.addf %111, %116 : vector<8x256xf32>
    %118 = vector.extract_strided_slice %76 {offsets = [7, 0], sizes = [1, 256], strides = [1, 1]} : vector<8x256xf32> to vector<1x256xf32>
    %119 = vector.extract_strided_slice %77 {offsets = [0, 3], sizes = [8, 1], strides = [1, 1]} : vector<8x4xf32> to vector<8x1xf32>
    %120 = vector.broadcast %118 : vector<1x256xf32> to vector<8x256xf32>
    %121 = vector.broadcast %119 : vector<8x1xf32> to vector<8x256xf32>
    %122 = arith.mulf %120, %121 : vector<8x256xf32>
    %123 = arith.addf %117, %122 : vector<8x256xf32>
    %124 = tpu.concatenate %100, %123 in 0 : vector<8x256xf32>, vector<8x256xf32> -> vector<16x256xf32>
    %c0_18 = arith.constant 0 : index
    %c0_19 = arith.constant 0 : index
    %125 = vector.load %arg4[%c0_18, %c0_19] : memref<16x256xf32, #tpu.memory_space<vmem>>, vector<16x256xf32>
    tpu.vector_store %arg4[%c0_18, %c0_19], %124 {strides = array<i32>} : memref<16x256xf32, #tpu.memory_space<vmem>>, vector<16x256xf32>,
    return
  }
  func.func @transform_0(%arg0: i32) -> (i32, i32) {
    %c0_i32 = arith.constant 0 : i32
    %c0_i32_0 = arith.constant 0 : i32
    return %arg0, %c0_i32 : i32, i32
  }
  func.func @transform_1(%arg0: i32) -> (i32, i32) {
    %c0_i32 = arith.constant 0 : i32
    %c0_i32_0 = arith.constant 0 : i32
    %c0_i32_1 = arith.constant 0 : i32
    return %c0_i32, %c0_i32_0 : i32, i32
  }
  func.func @transform_2(%arg0: i32) -> (i32, i32) {
    %c0_i32 = arith.constant 0 : i32
    %c0_i32_0 = arith.constant 0 : i32
    %c0_i32_1 = arith.constant 0 : i32
    return %c0_i32, %c0_i32_0 : i32, i32
  }
  func.func @transform_3(%arg0: i32) -> (i32, i32) {
    %c0_i32 = arith.constant 0 : i32
    %c0_i32_0 = arith.constant 0 : i32
    return %arg0, %c0_i32 : i32, i32
  }
}

</mosaic_0001>

<bundles_post_ra>
// kernel: tpu_custom_call.1
= control target key start
LH: loop header
LB: loop body
LE: loop exit
PB: predicated region body
PF: predicated region fallthrough
CT: control target
= control target key end

     0   :  { %8 = vsyncpa [#allocation4], 0  ;;  %s621_s0 = inlined_call_operand.hbm [shape: f32[8,256], index: 0, kind: input, shape index: {}]   ;;  %s622_s1 = inlined_call_operand.vmem [shape: f32[8,9], index: 1, kind: input, shape index: {}]   ;;  %s623_s2 = inlined_call_operand.vmem [shape: f32[8,4], index: 2, kind: input, shape index: {}]   ;;  %s624_s3 = inlined_call_operand.hbm [shape: f32[16,256], index: 3, kind: output, shape index: {}]  }
   0x1   :  { %9 = vsyncpa [#allocation5], 0  ;;  %s491_s12 = smov [#allocation3]   ;;  %s443_s16 = scalar_lea.hbm %s621_s0, 256 }
   0x2   :  { %s16_s13 = sshll.u32 %s491_s12, 4  ;;  %p444_p0 = scmp.ne.s32.totalorder %s621_s0, %s443_s16  ;;  %s17_s13 = int_to_ptr.vmem [resolvable:$true] %s16_s13 }
   0x3   :  { %p447_p1 = scmp.lt.u32.totalorder %s443_s16, %s621_s0 }
   0x5   :  { %p449_p2 = pnand %p447_p1, %p444_p0 }
   0x7   :  { %452 = shalt.err (!%p449_p2)
}
   0x8   :  { %s453_s21 = scalar_lea.vmem %s17_s13, 256  ;;  %p458_p4 = scmp.lt.s32.totalorder %s17_s13, %s17_s13 }
   0x9   :  { %p454_p3 = scmp.ne.s32.totalorder %s17_s13, %s453_s21  ;;  %p459_p5 = scmp.lt.s32.totalorder %s453_s21, %s453_s21 }
   0xb   :  { %p460_p6 = por %p459_p5, %p458_p4 }
   0xd   :  { %p461_p7 = pnand %p460_p6, %p454_p3 }
   0xf   :  { %464 = shalt.err (!%p461_p7)
}
  0x10   :  { %19 = dma.hbm_to_vmem [thread:$0]  %s621_s0, 256, %s17_s13, [#allocation4]  }
  0x11   :  { %487 = dma.done.wait [#allocation4], 256  }
  0x12   :  { %488 = vsyncadd [#allocation4], 4294967040  ;;  %v492_v0 = vmov 3   ;;  %v493_v1 = vmov 6   ;;  %v64_v2 = vld [vmem:[%s622_s1] sm:$0xff]  ;;  %v494_v3 = vmov 4  }
  0x13   :  { %430 = vset.pattern.permute.xlu0 %v492_v0  ;;  %432 = vset.pattern.permute.xlu1 %v493_v1  ;;  %v495_v4 = vmov 5   ;;  %v496_v5 = vmov 7   ;;  %v497_v6 = vmov 8   ;;  %v498_v7 = vmov 0   ;;  %v544_v10 = vld [vmem:[#allocation3 + $0x8] sm:$0xff]  ;;  %v547_v14 = vld [vmem:[#allocation3] sm:$0xff] }
  0x14   :  { %74 = vperm.xlu0 %430, %v64_v2   ;;  %99 = vperm.xlu1 %432, %v64_v2   ;;  %v499_v8 = vmov 2   ;;  %v500_v9 = vmov 1   ;;  %s501_s0 = smov 112   ;;  %s502_s1 = smov 96   ;;  %v563_v35 = vld [vmem:[%s623_s2] sm:$0xff]  ;;  %vm114_vm0 = vcmask 785408  }
  0x15   :  { %s503_s2 = smov 17   ;;  %vm89_vm1 = vcmask 916480   ;;  %s504_s28 = smov 16   ;;  %vm134_vm2 = vcmask 138240   ;;  %vm200_vm3 = vcmask 130048   ;;  %vm273_vm6 = vcmask 121856  }
  0x16   :  { %s505_s29 = smov 15   ;;  %s506_s30 = smov [#allocation6]  }
  0x17   :  { %s401_s4 = sshll.u32 %s506_s30, 4  ;;  %s402_s4 = int_to_ptr.vmem [resolvable:$true] %s401_s4 }
  0x18   :  { %431 = vset.pattern.permute.xlu0 %v494_v3  ;;  %433 = vset.pattern.permute.xlu1 %v495_v4  ;;  %s465_s5 = scalar_lea.vmem %s402_s4, 512  ;;  %p470_p9 = scmp.lt.s32.totalorder %s402_s4, %s402_s4 }
  0x19   :  { %149 = vperm.xlu0 %431, %v64_v2   ;;  %215 = vperm.xlu1 %433, %v64_v2   ;;  %p466_p8 = scmp.ne.s32.totalorder %s402_s4, %s465_s5  ;;  %p471_p10 = scmp.lt.s32.totalorder %s465_s5, %s465_s5 }
  0x1b   :  { %p472_p11 = por %p471_p10, %p470_p9 }
  0x1d   :  { %434 = vset.pattern.permute.xlu1 %v496_v5  ;;  %435 = vset.pattern.permute.xlu0 %v497_v6  ;;  %p473_p12 = pnand %p472_p11, %p466_p8 }
  0x1e   :  { %168 = vperm.xlu1 %434, %v64_v2   ;;  %239 = vperm.xlu0 %435, %v64_v2  }
  0x22   :  { %436 = vset.pattern.permute.xlu1 %v498_v7  ;;  %438 = vset.pattern.permute.xlu0 %v499_v8 }
  0x23   :  { %67 = vperm.xlu1 %436, %v64_v2   ;;  %208 = vperm.xlu0 %438, %v64_v2  }
  0x27   :  { %437 = vset.pattern.permute.xlu1 %v500_v9  ;;  %440 = vset.pattern.permute.xlu0 %v500_v9 }
  0x28   :  { %142 = vperm.xlu1 %437, %v64_v2  }
  0x2c   :  { %439 = vset.pattern.permute.xlu1 %v498_v7 }
  0x93   :  { %v75_v11 = vpop.permute.xlu0 %74  ;;  %v100_v15 = vpop.permute.xlu1 %99 }
  0x94   :  { %v77_v12 = vmul.f32 0.0, %v75_v11  ;;  %v79_v13 = vmul.f32 %v75_v11, %v544_v10  ;;  %v78_v16 = vmul.f32 %v75_v11, %v547_v14  ;;  %v103_v19 = vmul.f32 %v100_v15, %v544_v10 }
  0x95   :  { %v102_v23 = vmul.f32 %v100_v15, %v547_v14  ;;  %v104_v24 = vmul.f32 0.0, %v100_v15 }
  0x96   :  { %83 = vrot.lane.b32.xlu1 %v77_v12, %s501_s0  ;;  %87 = vrot.lane.b32.xlu0 %v79_v13, %s501_s0 }
  0x98   :  { %v150_v17 = vpop.permute.xlu0 %149  ;;  %v216_v21 = vpop.permute.xlu1 %215 }
  0x99   :  { %v153_v18 = vmul.f32 %v150_v17, %v544_v10  ;;  %v152_v20 = vmul.f32 %v150_v17, %v547_v14  ;;  %v218_v22 = vmul.f32 %v216_v21, %v547_v14  ;;  %v220_v26 = vmul.f32 0.0, %v216_v21 }
  0x9a   :  { %85 = vrot.lane.b32.xlu1 %v78_v16, %s501_s0  ;;  %v219_v28 = vmul.f32 %v216_v21, %v544_v10 }
  0x9b   :  { %158 = vrot.lane.b32.xlu0 %v153_v18, %s501_s0 }
  0x9d   :  { %v169_v25 = vpop.permute.xlu1 %168  ;;  %v240_v29 = vpop.permute.xlu0 %239 }
  0x9e   :  { %156 = vrot.lane.b32.xlu1 %v152_v20, %s501_s0  ;;  %v172_v27 = vmul.f32 %v169_v25, %v544_v10  ;;  %v242_v30 = vmul.f32 %v240_v29, %v547_v14  ;;  %v171_v31 = vmul.f32 %v169_v25, %v547_v14  ;;  %v173_v32 = vmul.f32 0.0, %v169_v25 }
  0x9f   :  { %110 = vrot.lane.b32.xlu0 %v103_v19, %s502_s1  ;;  %v244_v33 = vmul.f32 0.0, %v240_v29  ;;  %v243_v34 = vmul.f32 %v240_v29, %v544_v10 }
  0xa2   :  { %108 = vrot.lane.b32.xlu1 %v102_v23, %s502_s1  ;;  %v68_v36 = vpop.permute.xlu1 %67  ;;  %v209_v38 = vpop.permute.xlu0 %208 }
  0xa3   :  { %224 = vrot.lane.b32.xlu0 %v218_v22, %s501_s0  ;;  %v72_v47 = vmul.f32 %v68_v36, %v544_v10  ;;  %v211_v56 = vmul.f32 0.0, %v209_v38  ;;  %v70_v63 = vmul.f32 0.0, %v68_v36  ;;  %v212_v21 = vmul.f32 %v209_v38, %v547_v14 }
  0xa4   :  { %v213_v22 = vmul.f32 %v209_v38, %v544_v10 }
  0xa6   :  { %112 = vrot.lane.b32.xlu1 %v104_v24, %s502_s1 }
  0xa7   :  { %228 = vrot.lane.b32.xlu0 %v220_v26, %s501_s0  ;;  %v143_v37 = vpop.permute.xlu1 %142 }
  0xa8   :  { %v145_v54 = vmul.f32 0.0, %v143_v37  ;;  %v146_v9 = vmul.f32 %v143_v37, %v547_v14 }
  0xaa   :  { %226 = vrot.lane.b32.xlu1 %v219_v28, %s501_s0 }
  0xab   :  { %179 = vrot.lane.b32.xlu0 %v172_v27, %s502_s1 }
  0xae   :  { %177 = vrot.lane.b32.xlu1 %v171_v31, %s502_s1 }
  0xaf   :  { %248 = vrot.lane.b32.xlu0 %v242_v30, %s502_s1 }
  0xb2   :  { %181 = vrot.lane.b32.xlu1 %v173_v32, %s502_s1 }
  0xb3   :  { %252 = vrot.lane.b32.xlu0 %v244_v33, %s502_s1 }
  0xb6   :  { %250 = vrot.lane.b32.xlu1 %v243_v34, %s502_s1 }
  0xb7   :  { %307 = vperm.xlu0 %440, %v563_v35  }
  0xba   :  { %293 = vperm.xlu1 %439, %v563_v35  }
  0xbb   :  { %442 = vset.pattern.permute.xlu0 %v492_v0  ;;  %v147_v0 = vmul.f32 %v143_v37, %v544_v10 }
  0xbe   :  { %441 = vset.pattern.permute.xlu1 %v499_v8  ;;  %v71_v8 = vmul.f32 %v68_v36, %v547_v14  ;;  %v37_v14 = vlaneseq }
  0xc0   :  { %v38_v33 = vand.u32 127, %v37_v14 }
  0xc2   :  { %v39_v37 = vadd.s32 128, %v38_v33 }
 0x108   :  { %v84_v39 = vpop.permute.xlu1 %83  ;;  %v88_v40 = vpop.permute.xlu0 %87 }
 0x109   :  { %v97_v48 = vadd.f32 %v88_v40, %v72_v47 }
 0x10c   :  { %v86_v41 = vpop.permute.xlu1 %85 }
 0x10d   :  { %v159_v42 = vpop.permute.xlu0 %158  ;;  %v90_v60 = vsel %vm89_vm1, %v84_v39, %v86_v41  ;;  %v91_v5 = vsel %vm89_vm1, %v86_v41, %v88_v40  ;;  %v44_v39 = vand.u32 15, %v38_v33  ;;  %v51_v40 = vand.u32 15, %v39_v37 }
 0x10e   :  { %v95_v2 = vadd.f32 %v90_v60, %v70_v63  ;;  %v166_v3 = vadd.f32 %v159_v42, %v147_v0  ;;  %v96_v16 = vadd.f32 %v91_v5, %v71_v8 }
 0x10f   :  { %vm596_vm4 = vcmp.ge.s32.totalorder %v44_v39, 1  ;;  %vm600_vm5 = vcmp.ge.s32.totalorder %v51_v40, 1  ;;  %vm262_vm7 = vcmp.lt.s32.totalorder %v44_v39, 15  ;;  %vm263_vm8 = vcmp.lt.s32.totalorder %v51_v40, 15 }
 0x110   :  { %v157_v43 = vpop.permute.xlu1 %156 }
 0x111   :  { %v111_v44 = vpop.permute.xlu0 %110  ;;  %v164_v57 = vadd.f32 %v157_v43, %v145_v54  ;;  %v160_v6 = vsel %vm89_vm1, %v157_v43, %v159_v42 }
 0x112   :  { %v165_v17 = vadd.f32 %v160_v6, %v146_v9 }
 0x114   :  { %v109_v45 = vpop.permute.xlu1 %108 }
 0x115   :  { %v225_v46 = vpop.permute.xlu0 %224  ;;  %v120_v11 = vadd.f32 %v109_v45, %v95_v2  ;;  %v115_v13 = vsel %vm114_vm0, %v109_v45, %v111_v44 }
 0x116   :  { %v235_v58 = vadd.f32 %v225_v46, %v211_v56  ;;  %v121_v23 = vadd.f32 %v115_v13, %v96_v16 }
 0x118   :  { %v113_v49 = vpop.permute.xlu1 %112 }
 0x119   :  { %v116_v50 = vsel %vm114_vm0, %v111_v44, %v113_v49  ;;  %v229_v51 = vpop.permute.xlu0 %228 }
 0x11a   :  { %v122_v52 = vadd.f32 %v116_v50, %v97_v48 }
 0x11c   :  { %132 = vrot.lane.b32.xlu1 %v122_v52, %s503_s2  ;;  %v227_v53 = vpop.permute.xlu1 %226  ;;  %v284_v52 = vshrl.u32 %v37_v14, 7 }
 0x11d   :  { %v180_v55 = vpop.permute.xlu0 %179  ;;  %v230_v19 = vsel %vm89_vm1, %v225_v46, %v227_v53  ;;  %v231_v20 = vsel %vm89_vm1, %v227_v53, %v229_v51 }
 0x11e   :  { %v236_v28 = vadd.f32 %v230_v19, %v212_v21  ;;  %v237_v29 = vadd.f32 %v231_v20, %v213_v22  ;;  %v285_v63 = vsub.s32 0, %v284_v52  ;;  %v300_v0 = vsub.s32 1, %v284_v52 }
 0x11f   :  { %v358_v2 = vsub.s32 5, %v284_v52  ;;  %v332_v19 = vsub.s32 3, %v284_v52  ;;  %v382_v20 = vsub.s32 7, %v284_v52 }
 0x120   :  { %v178_v59 = vpop.permute.xlu1 %177 }
 0x121   :  { %v188_v61 = vadd.f32 %v178_v59, %v164_v57  ;;  %v249_v62 = vpop.permute.xlu0 %248  ;;  %v183_v15 = vsel %vm114_vm0, %v178_v59, %v180_v55 }
 0x122   :  { %v259_v1 = vadd.f32 %v249_v62, %v235_v58  ;;  %v189_v24 = vadd.f32 %v183_v15, %v165_v17 }
 0x123   :  { %194 = vrot.lane.b32.xlu0 %v188_v61, %s504_s28 }
 0x124   :  { %267 = vrot.lane.b32.xlu1 %v259_v1, %s505_s29  ;;  %v182_v4 = vpop.permute.xlu1 %181  ;;  %v348_v1 = vsub.s32 4, %v284_v52 }
 0x125   :  { %v184_v7 = vsel %vm114_vm0, %v180_v55, %v182_v4  ;;  %v253_v25 = vpop.permute.xlu0 %252 }
 0x126   :  { %v190_v12 = vadd.f32 %v184_v7, %v166_v3 }
 0x128   :  { %128 = vrot.lane.b32.xlu1 %v120_v11, %s503_s2  ;;  %198 = vrot.lane.b32.xlu0 %v190_v12, %s504_s28  ;;  %v251_v18 = vpop.permute.xlu1 %250  ;;  %v316_v12 = vsub.s32 2, %v284_v52 }
 0x129   :  { %v254_v26 = vsel %vm114_vm0, %v249_v62, %v251_v18  ;;  %v255_v27 = vsel %vm114_vm0, %v251_v18, %v253_v25  ;;  %v370_v18 = vsub.s32 6, %v284_v52 }
 0x12a   :  { %v260_v30 = vadd.f32 %v254_v26, %v236_v28  ;;  %v261_v31 = vadd.f32 %v255_v27, %v237_v29 }
 0x12c   :  { %196 = vrot.lane.b32.xlu1 %v189_v24, %s504_s28  ;;  %130 = vrot.lane.b32.xlu0 %v121_v23, %s503_s2 }
 0x130   :  { %269 = vrot.lane.b32.xlu1 %v260_v30, %s505_s29  ;;  %271 = vrot.lane.b32.xlu0 %v261_v31, %s505_s29 }
 0x134   :  { %323 = vperm.xlu1 %441, %v563_v35   ;;  %339 = vperm.xlu0 %442, %v563_v35  }
 0x136   :  { %v308_v32 = vpop.permute.xlu0 %307 }
 0x139   :  { %v294_v10 = vpop.permute.xlu1 %293 }
 0x18e   :  { %v133_v34 = vpop.permute.xlu1 %132 }
 0x195   :  { %v195_v36 = vpop.permute.xlu0 %194 }
 0x196   :  { %v268_v38 = vpop.permute.xlu1 %267 }
 0x19a   :  { %v199_v41 = vpop.permute.xlu0 %198  ;;  %v129_v42 = vpop.permute.xlu1 %128 }
 0x19e   :  { %v197_v44 = vpop.permute.xlu1 %196  ;;  %v131_v45 = vpop.permute.xlu0 %130 }
 0x19f   :  { %v135_v46 = vsel %vm134_vm2, %v129_v42, %v131_v45  ;;  %v136_v47 = vsel %vm134_vm2, %v131_v45, %v133_v34  ;;  %v201_v48 = vsel %vm200_vm3, %v195_v36, %v197_v44  ;;  %v202_v49 = vsel %vm200_vm3, %v197_v44, %v199_v41 }
 0x1a0   :  { %v139_v50 = vsel %vm596_vm4, %v135_v46, 0.0  ;;  %v140_v51 = vsel %vm600_vm5, %v136_v47, 0.0 }
 0x1a1   :  { %v205_v55 = vadd.f32 %v201_v48, %v139_v50  ;;  %v206_v56 = vadd.f32 %v202_v49, %v140_v51 }
 0x1a2   :  { %v270_v53 = vpop.permute.xlu1 %269  ;;  %v272_v54 = vpop.permute.xlu0 %271 }
 0x1a3   :  { %v274_v57 = vsel %vm273_vm6, %v268_v38, %v270_v53  ;;  %v275_v58 = vsel %vm273_vm6, %v270_v53, %v272_v54 }
 0x1a4   :  { %v278_v59 = vsel %vm262_vm7, %v274_v57, 0.0  ;;  %v279_v60 = vsel %vm263_vm8, %v275_v58, 0.0 }
 0x1a5   :  { %v280_v61 = vadd.f32 %v278_v59, %v205_v55  ;;  %v281_v62 = vadd.f32 %v279_v60, %v206_v56 }
 0x1a7   :  { %v286_v3 = vrot.slane %v280_v61, %v285_v63  ;;  %v290_v4 = vrot.slane %v281_v62, %v285_v63  ;;  %v301_v5 = vrot.slane %v280_v61, %v300_v0  ;;  %v305_v6 = vrot.slane %v281_v62, %v300_v0 }
 0x1a8   :  { %v349_v7 = vrot.slane %v280_v61, %v348_v1  ;;  %v353_v8 = vrot.slane %v281_v62, %v348_v1  ;;  %v359_v9 = vrot.slane %v280_v61, %v358_v2  ;;  %v363_v11 = vrot.slane %v281_v62, %v358_v2 }
 0x1a9   :  { %v296_v13 = vmul.f32 %v294_v10, %v286_v3  ;;  %v297_v15 = vmul.f32 %v294_v10, %v290_v4  ;;  %v310_v16 = vmul.f32 %v308_v32, %v301_v5  ;;  %v311_v17 = vmul.f32 %v308_v32, %v305_v6 }
 0x1aa   :  { %v354_v21 = vmul.f32 %v349_v7, %v294_v10  ;;  %v355_v22 = vmul.f32 %v353_v8, %v294_v10  ;;  %v364_v23 = vmul.f32 %v359_v9, %v308_v32  ;;  %v365_v24 = vmul.f32 %v363_v11, %v308_v32 }
 0x1ab   :  { %v312_v25 = vadd.f32 %v310_v16, %v296_v13  ;;  %v313_v26 = vadd.f32 %v311_v17, %v297_v15  ;;  %v317_v27 = vrot.slane %v280_v61, %v316_v12  ;;  %v321_v28 = vrot.slane %v281_v62, %v316_v12 }
 0x1ac   :  { %v371_v29 = vrot.slane %v280_v61, %v370_v18  ;;  %v375_v30 = vrot.slane %v281_v62, %v370_v18  ;;  %v333_v31 = vrot.slane %v280_v61, %v332_v19  ;;  %v337_v14 = vrot.slane %v281_v62, %v332_v19 }
 0x1ad   :  { %v366_v34 = vadd.f32 %v364_v23, %v354_v21  ;;  %v367_v36 = vadd.f32 %v365_v24, %v355_v22  ;;  %v383_v37 = vrot.slane %v280_v61, %v382_v20  ;;  %v387_v38 = vrot.slane %v281_v62, %v382_v20 }
 0x1b3   :  { %v324_v33 = vpop.permute.xlu1 %323  ;;  %v340_v39 = vpop.permute.xlu0 %339 }
 0x1b4   :  { %v326_v40 = vmul.f32 %v324_v33, %v317_v27  ;;  %v327_v41 = vmul.f32 %v324_v33, %v321_v28  ;;  %v376_v42 = vmul.f32 %v371_v29, %v324_v33  ;;  %v377_v10 = vmul.f32 %v375_v30, %v324_v33 }
 0x1b5   :  { %v342_v43 = vmul.f32 %v340_v39, %v333_v31  ;;  %v343_v32 = vmul.f32 %v340_v39, %v337_v14  ;;  %v388_v35 = vmul.f32 %v383_v37, %v340_v39  ;;  %v389_v44 = vmul.f32 %v387_v38, %v340_v39 }
 0x1b6   :  { %v328_v45 = vadd.f32 %v326_v40, %v312_v25  ;;  %v329_v46 = vadd.f32 %v327_v41, %v313_v26  ;;  %v378_v47 = vadd.f32 %v376_v42, %v366_v34  ;;  %v379_v48 = vadd.f32 %v377_v10, %v367_v36 }
 0x1b8   :  { %v344_v49 = vadd.f32 %v342_v43, %v328_v45  ;;  %v345_v50 = vadd.f32 %v343_v32, %v329_v46  ;;  %v390_v51 = vadd.f32 %v388_v35, %v378_v47  ;;  %v391_v52 = vadd.f32 %v389_v44, %v379_v48 }
 0x1ba   :  { %392 = vst [vmem:[#allocation6] sm:$0xff] %v344_v49  ;;  %393 = vst [vmem:[#allocation6 + $0x8] sm:$0xff] %v345_v50 }
 0x1bb   :  { %394 = vst [vmem:[#allocation6 + $0x10] sm:$0xff] %v390_v51  ;;  %395 = vst [vmem:[#allocation6 + $0x18] sm:$0xff] %v391_v52 }
 0x1bc   :  { %476 = shalt.err (!%p473_p12)
}
 0x1bd   :  { %s477_s8 = scalar_lea.hbm %s624_s3, 512 }
 0x1be   :  { %p478_p13 = scmp.ne.s32.totalorder %s624_s3, %s477_s8  ;;  %p481_p0 = scmp.lt.u32.totalorder %s477_s8, %s624_s3 }
 0x1c0   :  { %p483_p1 = pnand %p481_p0, %p478_p13 }
 0x1c2   :  { %486 = shalt.err (!%p483_p1)
}
 0x1c3   :  { %s507_s13 = smov 256  }
 0x1c4   :  { %407 = dma.vmem_to_hbm [thread:$0]  %s402_s4, 512, %s624_s3, [#allocation5], %s507_s13, %s507_s13, %s504_s28  }
 0x1c5   :  { %489 = dma.done.wait [#allocation5], 512  }
 0x1c6   :  { %490 = vsyncadd [#allocation5], 4294966784 }
 0x1c7   :  { %411 = vsyncpa [#allocation4], 1 }
 0x1c8   :  { %412 = vsyncpa [#allocation5], 1 }

</bundles_post_ra>
